<compile_context>
chip_gen: v7x
topology: tpu7x:2x2x1
jax: 0.10.0
libtpu: 0.0.40
codegen_flags: <defaults>
</compile_context>

<pallas_src>
import functools

import jax
import jax.numpy as jnp
from jax.experimental import pallas as pl
from jax.experimental.pallas import tpu as pltpu


# --------------------------------------------------------------------------
# Phase 1: streaming sum of x over the sequence axis
# --------------------------------------------------------------------------
def _seq_sum_kernel(x_ref, partial_ref, acc_ref):
    """Grid: (num_splits, inner_steps).

    Axis 0 is 'parallel' (one sequence split per TensorCore on v7x), axis 1 is
    the 'arbitrary' reduction over sequence tiles.  acc_ref holds the running
    f32 sequence-sum of x for the current split; the split's partial sum is
    flushed to its own output block on the last inner step.
    """
    s = pl.program_id(1)

    @pl.when(s == 0)
    def _init():
        acc_ref[...] = jnp.zeros_like(acc_ref)

    # Pure VPU reduction of the streamed tile -- no matmul in the hot loop.
    acc_ref[...] += jnp.sum(x_ref[...].astype(jnp.float32), axis=1)  # (B, Din)

    @pl.when(s == pl.num_programs(1) - 1)
    def _flush():
        partial_ref[...] = acc_ref[...]


# --------------------------------------------------------------------------
# Phase 2: tiny head -- combine partial sums, fc1, fc2, tanh, projection
# --------------------------------------------------------------------------
def _head_kernel(partial_ref, w1_ref, b1_ref, w2_ref, b2_ref, w3_ref, b3_ref,
                 out_ref, *, seq_len):
    # Combine per-split partial sums -> mean of x over the sequence axis.
    m = jnp.sum(partial_ref[...], axis=0) / jnp.float32(seq_len)       # (B, Din)
    # fc1 applied once to the mean (exact, by linearity).
    h = jnp.dot(m, w1_ref[...], preferred_element_type=jnp.float32) + b1_ref[...]
    # fc2 + tanh
    y = jnp.tanh(jnp.dot(h, w2_ref[...], preferred_element_type=jnp.float32)
                 + b2_ref[...])
    # projection
    out = jnp.dot(y, w3_ref[...], preferred_element_type=jnp.float32) + b3_ref[...]
    out_ref[...] = out.astype(out_ref.dtype)


# --------------------------------------------------------------------------
# Wrapper
# --------------------------------------------------------------------------
def _pick_seq_block(seq_len, max_rows):
    """Largest multiple-of-8 divisor of seq_len that is <= max_rows (sublane
    alignment of the (B, seq_block, D_in) tile).  Returns None if none."""
    best = None
    d = 8
    limit = min(seq_len, max_rows)
    while d <= limit:
        if seq_len % d == 0:
            best = d
        d += 8
    return best


def finetune_decoder_forward(x, params, *,
                             num_splits=None,
                             target_tile_bytes=8 << 20,   # per x tile (x2 double-buffered)
                             vmem_limit_bytes=48 << 20,   # fits v7x 64 MiB physical
                             stream_dtype=None):
    """x: (B, S, D_in).  params = (w1, b1, w2, b2, w3, b3); weights are stored
    transposed vs. torch as (in_features, out_features), biases as (1, out).

    stream_dtype: optionally cast x (e.g. jnp.bfloat16 on v6e/v7x) before the
    streaming reduction to halve HBM traffic; accumulation stays f32.
    """
    B, S, Din = x.shape
    w1, b1, w2, b2, w3, b3 = params
    P = w3.shape[1]
    out_dtype = x.dtype

    if stream_dtype is not None and x.dtype != stream_dtype:
        x = x.astype(stream_dtype)

    # --- sequence split: gives both v7x TensorCores work ('parallel' axis);
    #     on single-core chips it is just two reduction groups.
    if num_splits is None:
        num_splits = 2
    if S % num_splits != 0:
        num_splits = 1
    s_per_split = S // num_splits

    # --- largest sequence tile whose double-buffered copy fits the budget.
    bytes_per_row = B * Din * jnp.dtype(x.dtype).itemsize
    max_rows = max(8, target_tile_bytes // max(1, bytes_per_row))
    seq_block = _pick_seq_block(s_per_split, max_rows)
    if seq_block is None:
        # Fall back: single split, full-length tile (block == full seq dim is
        # always layout-legal).  Only hit for tiny / oddly-shaped sequences.
        num_splits = 1
        s_per_split = S
        seq_block = _pick_seq_block(S, max_rows) or S
    inner_steps = s_per_split // seq_block
    grid = (num_splits, inner_steps)

    partials = pl.pallas_call(
        _seq_sum_kernel,
        out_shape=jax.ShapeDtypeStruct((num_splits, B, Din), jnp.float32),
        grid_spec=pltpu.PrefetchScalarGridSpec(
            num_scalar_prefetch=0,
            grid=grid,
            in_specs=[
                pl.BlockSpec((B, seq_block, Din),
                             lambda p, s: (0, p * inner_steps + s, 0)),
            ],
            # Leading dim squeezed: each split owns its own (B, Din) block.
            out_specs=pl.BlockSpec((None, B, Din), lambda p, s: (p, 0, 0)),
            scratch_shapes=[pltpu.VMEM((B, Din), jnp.float32)],
        ),
        compiler_params=pltpu.CompilerParams(
            dimension_semantics=("parallel", "arbitrary"),
            vmem_limit_bytes=vmem_limit_bytes),
    )(x)

    # --- tiny head: runs once; head weights never enter the streaming
    #     pipeline's double-buffered VMEM.  Feature dims here are far below
    #     128 lanes; at real model sizes pad them to multiples of 128.
    head = functools.partial(_head_kernel, seq_len=S)
    out = pl.pallas_call(
        head,
        out_shape=jax.ShapeDtypeStruct((B, P), out_dtype),
    )(partials, w1, b1, w2, b2, w3, b3)
    return out


# --------------------------------------------------------------------------
# Reference + init
# --------------------------------------------------------------------------
def init_params(key, input_dim, hidden_dim, output_dim, projection_dim):
    """Deterministic nn.Linear-style init: U(-1/sqrt(fan_in), 1/sqrt(fan_in))."""
    def linear(k, fan_in, fan_out):
        kw, kb = jax.random.split(k)
        bound = 1.0 / jnp.sqrt(jnp.float32(fan_in))
        w = jax.random.uniform(kw, (fan_in, fan_out), jnp.float32, -bound, bound)
        b = jax.random.uniform(kb, (1, fan_out), jnp.float32, -bound, bound)
        return w, b

    k1, k2, k3 = jax.random.split(key, 3)
    w1, b1 = linear(k1, input_dim, hidden_dim)
    w2, b2 = linear(k2, hidden_dim, output_dim)
    w3, b3 = linear(k3, output_dim, projection_dim)
    return (w1, b1, w2, b2, w3, b3)


def reference_forward(x, params):
    """Pure-JAX reference mirroring the PyTorch forward (decoder == identity)."""
    w1, b1, w2, b2, w3, b3 = params
    h = x @ w1 + b1                      # fc1
    m = jnp.mean(h, axis=1)              # mean over seq (dim=1)
    y = jnp.tanh(m @ w2 + b2)            # fc2 + tanh
    return y @ w3 + b3                   # projection


if __name__ == "__main__":
    B, S = 2, 16
    input_dim, hidden_dim, output_dim, projection_dim = 32, 32, 32, 16

    key = jax.random.PRNGKey(0)
    kx, kp = jax.random.split(key)
    x = jax.random.normal(kx, (B, S, input_dim), jnp.float32)
    params = init_params(kp, input_dim, hidden_dim, output_dim, projection_dim)

    out = finetune_decoder_forward(x, params)
    out = jax.block_until_ready(out)

    ref = reference_forward(x, params)
    assert out.shape == (B, projection_dim)
    assert jnp.allclose(out, ref, atol=1e-4, rtol=1e-4)

    print("KERNEL_OK")
</pallas_src>

<mosaic_0001>
module attributes {stable_mosaic.version = 11 : i64} {
  func.func @_seq_sum_kernel(%arg0: i32, %arg1: i32, %arg2: memref<2x8x32xf32, #tpu.memory_space<vmem>>, %arg3: memref<1x2x32xf32, #tpu.memory_space<vmem>>, %arg4: memref<2x32xf32, #tpu.memory_space<vmem>>) attributes {dimension_semantics = [#tpu.dimension_semantics<parallel>, #tpu.dimension_semantics<arbitrary>], iteration_bounds = array<i64: 2, 1>, scalar_prefetch = 0 : i64, scratch_operands = 1 : i64, tpu.core_type = #tpu.core_type<tc>, window_params = [{transform_indices = @transform_0, window_bounds = array<i64: 2, 8, 32>}, {transform_indices = @transform_1, window_bounds = array<i64: 1, 2, 32>}]} {
    %c0_i32 = arith.constant 0 : i32
    %0 = arith.cmpi eq, %arg1, %c0_i32 : i32
    %1 = arith.extui %0 : i1 to i32
    %c0_i32_0 = arith.constant 0 : i32
    %2 = arith.cmpi ne, %1, %c0_i32_0 : i32
    scf.if %2 {
      %cst_9 = arith.constant 0.000000e+00 : f32
      %11 = vector.broadcast %cst_9 : f32 to vector<2x32xf32>
      %c0_10 = arith.constant 0 : index
      %c0_11 = arith.constant 0 : index
      %12 = vector.load %arg4[%c0_10, %c0_11] : memref<2x32xf32, #tpu.memory_space<vmem>>, vector<2x32xf32>
      tpu.vector_store %arg4[%c0_10, %c0_11], %11 {strides = array<i32>} : memref<2x32xf32, #tpu.memory_space<vmem>>, vector<2x32xf32>,
    } else {
    }
    %c0 = arith.constant 0 : index
    %c0_1 = arith.constant 0 : index
    %3 = vector.load %arg4[%c0, %c0_1] : memref<2x32xf32, #tpu.memory_space<vmem>>, vector<2x32xf32>
    %c0_2 = arith.constant 0 : index
    %c0_3 = arith.constant 0 : index
    %c0_4 = arith.constant 0 : index
    %4 = vector.load %arg2[%c0_2, %c0_3, %c0_4] : memref<2x8x32xf32, #tpu.memory_space<vmem>>, vector<2x8x32xf32>
    %cst = arith.constant dense<0.000000e+00> : vector<2x32xf32>
    %5 = vector.multi_reduction <add>, %4, %cst [1] : vector<2x8x32xf32> to vector<2x32xf32>
    %6 = arith.addf %3, %5 : vector<2x32xf32>
    %c0_5 = arith.constant 0 : index
    %c0_6 = arith.constant 0 : index
    %7 = vector.load %arg4[%c0_5, %c0_6] : memref<2x32xf32, #tpu.memory_space<vmem>>, vector<2x32xf32>
    tpu.vector_store %arg4[%c0_5, %c0_6], %6 {strides = array<i32>} : memref<2x32xf32, #tpu.memory_space<vmem>>, vector<2x32xf32>,
    %c0_i32_7 = arith.constant 0 : i32
    %8 = arith.cmpi eq, %arg1, %c0_i32_7 : i32
    %9 = arith.extui %8 : i1 to i32
    %c0_i32_8 = arith.constant 0 : i32
    %10 = arith.cmpi ne, %9, %c0_i32_8 : i32
    scf.if %10 {
      %c0_9 = arith.constant 0 : index
      %c0_10 = arith.constant 0 : index
      %11 = vector.load %arg4[%c0_9, %c0_10] : memref<2x32xf32, #tpu.memory_space<vmem>>, vector<2x32xf32>
      %c0_11 = arith.constant 0 : index
      %c0_12 = arith.constant 0 : index
      %c0_13 = arith.constant 0 : index
      %12 = vector.load %arg3[%c0_11, %c0_12, %c0_13] : memref<1x2x32xf32, #tpu.memory_space<vmem>>, vector<1x2x32xf32>
      %13 = vector.shape_cast %12 : vector<1x2x32xf32> to vector<2x32xf32>
      %14 = vector.shape_cast %11 : vector<2x32xf32> to vector<1x2x32xf32>
      tpu.vector_store %arg3[%c0_11, %c0_12, %c0_13], %14 {strides = array<i32>} : memref<1x2x32xf32, #tpu.memory_space<vmem>>, vector<1x2x32xf32>,
    } else {
    }
    return
  }
  func.func @transform_0(%arg0: i32, %arg1: i32) -> (i32, i32, i32) {
    %c1_i32 = arith.constant 1 : i32
    %0 = arith.muli %arg0, %c1_i32 : i32
    %1 = arith.addi %0, %arg1 : i32
    %c0_i32 = arith.constant 0 : i32
    %c0_i32_0 = arith.constant 0 : i32
    %c0_i32_1 = arith.constant 0 : i32
    return %c0_i32, %1, %c0_i32_0 : i32, i32, i32
  }
  func.func @transform_1(%arg0: i32, %arg1: i32) -> (i32, i32, i32) {
    %c0_i32 = arith.constant 0 : i32
    %c0_i32_0 = arith.constant 0 : i32
    %c0_i32_1 = arith.constant 0 : i32
    return %arg0, %c0_i32, %c0_i32_0 : i32, i32, i32
  }
}

</mosaic_0001>

<bundles_post_ra>
// kernel: tpu_custom_call.1
= control target key start
LH: loop header
LB: loop body
LE: loop exit
PB: predicated region body
PF: predicated region fallthrough
CT: control target
= control target key end

     0   :  { %6 = vsyncpa [#allocation4], 0  ;;  %s664_s0 = inlined_call_operand.hbm [shape: f32[2,16,32], index: 0, kind: input, shape index: {}]   ;;  %s665_s1 = inlined_call_operand.hbm [shape: f32[2,2,32], index: 1, kind: output, shape index: {}]  }
   0x1   :  { %8 = vsyncpa [#allocation4 + $0x1], 0 }
   0x2   :  { %9 = vsyncpa [#allocation5], 0 }
   0x3   :  { %11 = vsyncpa [#allocation5 + $0x1], 0  ;;  %s489_s6 = smov 0   ;;  %s491_s7 = smov 0  }
   0x4   :  { %s493_s8 = smov 0   ;;  %s495_s9 = smov 0  }
   0x5   :  { %s497_s10 = smov 0   ;;  %s499_s11 = smov 0  }
   0x6 LB: > { %s280_s12 = sadd.s32 4294967295, %s471_s11   ;;  %s281_s13 = sadd.s32 4294967294, %s471_s11   ;;  %s471_s11 = sphi %s499_s11, %s17_s11   ;;  %s467_s10 = sphi %s497_s10, %s679_s10   ;;  %s463_s9 = sphi %s495_s9, %s678_s9   ;;  %s459_s8 = sphi %s493_s8, %s677_s8   ;;  %s455_s7 = sphi %s491_s7, %s676_s7   ;;  %s451_s6 = sphi %s489_s6, %s675_s6  }
   0x7   : > { %s29_s14 = sadd.s32 1, %s467_s10  ;;  %s38_s15 = sadd.s32 1, %s459_s8 }
   0x8   : > { %p31_p0 = scmp.ge.s32.totalorder %s29_s14, 2  ;;  %p45_p1 = scmp.ne.s32.totalorder %s459_s8, %s455_s7 }
   0x9   : > { %p46_p2 = scmp.eq.s32.totalorder %s471_s11, 0  ;;  %p51_p3 = scmp.ne.s32.totalorder %s455_s7, %s451_s6 }
   0xa   : > { %s681_s14 = smov (%p31_p0, %s29_s14), 0  ;;  %p52_p5 = scmp.eq.s32.totalorder %s280_s12, 0 }
   0xb   : > { %p530_p4 = por %p46_p2, %p45_p1  ;;  %s35_s17 = ssub.s32 %s467_s10, %s681_s14 }
   0xc   : > { %p75_p6 = scmp.eq.s32.totalorder %s280_s12, 1  ;;  %p36_p7 = scmp.eq.s32.totalorder %s35_s17, 0 }
   0xd   : > { %p536_p8 = por %p52_p5, %p51_p3  ;;  %p81_p10 = scmp.eq.s32.totalorder %s281_s13, 1 }
   0xe   : > { %p540_p9 = por %p75_p6, %p45_p1  ;;  %p305_p13 = scmp.lt.s32.totalorder %s471_s11, 2 }
   0xf   : > { %s545_s20 = scalar_select %p36_p7, %s459_s8, %s38_s15  }
  0x10   : > { %s669_s19 = scalar_select %p540_p9, 1, 0 }
  0x11   : > { %p547_p11 = por %p81_p10, %p51_p3  ;;  %s101_s22 = sand.u32 1, %s459_s8  }
  0x12   : > { %s284_s23 = sshll.u32 %s101_s22, 4  ;;  %s285_s24 = sshll.u32 %s467_s10, 7 }
  0x13   : > { %s670_s21 = scalar_select %p547_p11, 1, 0 }
  0x14   : > { %s558_s27 = scalar_lea.hbm %s664_s0, %s285_s24  ;;  %s105_s28 = scalar_lea.vmem [#allocation3], %s284_s23 }
  0x15   : > { %s112_s29 = sshll.u32 %s105_s28, 4  ;;  %p564_p0 = pnand %p305_p13, %p530_p4  ;;  %s560_s29 = int_to_ptr.vmem [resolvable:$true] %s112_s29 }
  0x16   : > { %s568_s2 = scalar_lea.sflag [#allocation4], %s101_s22  ;;  %s359_s3 = scalar_lea.hbm %s558_s27, 256 }
  0x17   : > { %p360_p1 = scmp.ne.s32.totalorder %s558_s27, %s359_s3  ;;  %p361_p2 = pneg %p564_p0 }
  0x18   : > { %s364_s12 = scalar_lea.hbm %s664_s0, 512  ;;  %p365_p4 = scmp.lt.u32.totalorder %s558_s27, %s664_s0 }
  0x19   : > { %p362_p3 = pnand %p361_p2, %p360_p1  ;;  %p366_p6 = scmp.lt.u32.totalorder %s364_s12, %s359_s3 }
  0x1a   : > { %p368_p10 = scmp.lt.u32.totalorder %s359_s3, %s558_s27 }
  0x1b   : > { %p363_p5 = pneg %p362_p3  ;;  %p367_p7 = por %p366_p6, %p365_p4 }
  0x1d   : > { %p369_p13 = por %p368_p10, %p367_p7 }
  0x1f   : > { %p370_p12 = pnand %p369_p13, %p363_p5 }
  0x21   : > { %373 = shalt.err (!%p370_p12)
}
  0x22   : > { %s374_s16 = scalar_lea.vmem %s560_s29, 256  ;;  %s473_s17 = smov [#allocation3]  }
  0x23   : > { %p375_p1 = scmp.ne.s32.totalorder %s560_s29, %s374_s16  ;;  %s379_s22 = sshll.u32 %s473_s17, 4  ;;  %s380_s22 = int_to_ptr.vmem [resolvable:$false] %s379_s22 }
  0x24   : > { %s381_s23 = scalar_lea.vmem %s380_s22, 512  ;;  %p382_p9 = scmp.lt.s32.totalorder %s560_s29, %s380_s22 }
  0x25   : > { %p377_p3 = pnand %p375_p1, %p361_p2  ;;  %p383_p4 = scmp.lt.s32.totalorder %s381_s23, %s374_s16 }
  0x27   : > { %p378_p11 = pneg %p377_p3  ;;  %p384_p6 = por %p383_p4, %p382_p9 }
  0x29   : > { %p385_p7 = pnand %p384_p6, %p378_p11 }
  0x2b   : > { %388 = shalt.err (!%p385_p7)
}
  0x2c   : > { %s474_s24 = smov 256   ;;  %s475_s25 = smov 128  }
  0x2d   : > { %s476_s26 = smov 8   ;;  %p286_p12 = scmp.ge.s32.totalorder %s471_s11, 1 }
  0x2e   : > { %300 = dma.hbm_to_vmem [thread:$0]  (!%p564_p0), %s558_s27, 256, %s560_s29, %s568_s2, %s474_s24, %s475_s25, %s476_s26  }
  0x2f   : > { %p120_p2 = scmp.lt.s32.totalorder %s471_s11, 3 }
  0x31   : > { %p121_p5 = pnand %p286_p12, %p120_p2 }
  0x32   : > { %s599_s28 = sand.u32 (!%p121_p5), 1, %s455_s7  }
  0x33   : > { %124 = sbr.rel (%p121_p5) target bundleno = 98 (0x62), region = 24  ;;  %s287_s3 = sshll.u32 (!%p121_p5), %s599_s28, 4 }
  0x34   : > { %s127_s4 = scalar_lea.sflag (!%p121_p5), [#allocation4], %s599_s28  ;;  %s130_s5 = scalar_lea.vmem (!%p121_p5), [#allocation3], %s287_s3 }
  0x3a   : > { %442 = dma.done.wait (%p536_p8), %s127_s4, 256  }
  0x3b   : > { %444 = vsyncadd (%p536_p8), %s127_s4, 4294967040  ;;  %vm154_vm0 = vcmask 254976   ;;  %v477_v0 = vmov 0.0   ;;  %vm159_vm1 = vcmask 261120   ;;  %v157_v1 = vld [vmem:[%s130_s5] sm:$0xff]  ;;  %v158_v2 = vld [vmem:[%s130_s5 + $0x8] sm:$0xff] }
  0x3c   : > { %155 = vst.msk [vmem:[#allocation2] sm:$0x3] %vm154_vm0, %v477_v0  ;;  %v160_v3 = vsel %vm159_vm1, %v157_v1, 0.0  ;;  %v167_v4 = vsel %vm159_vm1, %v158_v2, 0.0  ;;  %vm176_vm2 = vcmask 1041409   ;;  %s288_s18 = sshll.u32 %s599_s28, 1 }
  0x3d   : > { %v161_v5 = vrot.slane %v160_v3, 4  ;;  %v168_v6 = vrot.slane %v167_v4, 4  ;;  %s148_s27 = scalar_lea.vmem [#allocation6], %s288_s18  ;;  %s290_s30 = sshll.u32 %s463_s9, 5 }
  0x3e   : > { %s201_s29 = sshll.u32 %s148_s27, 4  ;;  %s616_s13 = scalar_lea.hbm %s665_s1, %s290_s30  ;;  %s611_s29 = int_to_ptr.vmem [resolvable:$true] %s201_s29 }
  0x3f   : > { %v162_v7 = vadd.f32 %v161_v5, %v160_v3  ;;  %v169_v8 = vadd.f32 %v168_v6, %v167_v4  ;;  %s188_s15 = scalar_lea.sflag [#allocation5], %s599_s28  ;;  %s389_s16 = scalar_lea.vmem %s611_s29, 32 }
  0x40   : > { %p390_p8 = scmp.ne.s32.totalorder %s611_s29, %s389_s16  ;;  %p672_p9 = scmp.ne.s32.totalorder %s669_s19, 0 }
  0x41   : > { %v163_v9 = vrot.slane %v162_v7, 2  ;;  %v170_v10 = vrot.slane %v169_v8, 2  ;;  %s478_s9 = smov [#allocation6]  }
  0x42   : > { %p391_p11 = pnand %p390_p8, %p672_p9  ;;  %s393_s17 = sshll.u32 %s478_s9, 4  ;;  %s394_s17 = int_to_ptr.vmem [resolvable:$false] %s393_s17 }
  0x43   : > { %v164_v11 = vadd.f32 %v163_v9, %v162_v7  ;;  %v171_v12 = vadd.f32 %v170_v10, %v169_v8  ;;  %v156_v15 = vld [vmem:[#allocation2] sm:$0x3]  ;;  %s395_s22 = scalar_lea.vmem %s394_s17, 64  ;;  %p396_p10 = scmp.lt.s32.totalorder %s611_s29, %s394_s17 }
  0x44   : > { %p392_p0 = pneg %p391_p11  ;;  %p397_p13 = scmp.lt.s32.totalorder %s395_s22, %s389_s16 }
  0x45   : > { %v165_v13 = vrot.slane %v164_v11, 1  ;;  %v172_v14 = vrot.slane %v171_v12, 1 }
  0x46   : > { %p398_p1 = por %p397_p13, %p396_p10 }
  0x47   : > { %v166_v16 = vadd.f32 %v165_v13, %v164_v11  ;;  %v173_v17 = vadd.f32 %v172_v14, %v171_v12 }
  0x48   : > { %p399_p3 = pnand %p398_p1, %p392_p0 }
  0x49   : > { %v177_v18 = vsel %vm176_vm2, %v173_v17, %v166_v16 }
  0x4a   : > { %v179_v19 = vadd.f32 %v177_v18, %v156_v15 }
  0x4c   : > { %181 = vst.msk [vmem:[#allocation2] sm:$0x3] %vm154_vm0, %v179_v19 }
  0x53   : > { %v185_v20 = vld [vmem:[#allocation2] sm:$0x3] }
  0x54   : > { %186 = vst.msk [vmem:[%s148_s27] sm:$0x3] %vm154_vm0, %v185_v20 }
  0x55   : > { %402 = shalt.err (!%p399_p3)
}
  0x56   : > { %s403_s23 = scalar_lea.hbm %s616_s13, 32  ;;  %s407_s26 = scalar_lea.hbm %s665_s1, 64 }
  0x57   : > { %p404_p4 = scmp.ne.s32.totalorder %s616_s13, %s403_s23  ;;  %p408_p12 = scmp.lt.u32.totalorder %s616_s13, %s665_s1 }
  0x58   : > { %p409_p2 = scmp.lt.u32.totalorder %s407_s26, %s403_s23  ;;  %p411_p8 = scmp.lt.u32.totalorder %s403_s23, %s616_s13 }
  0x59   : > { %p405_p6 = pnand %p404_p4, %p672_p9 }
  0x5a   : > { %p410_p5 = por %p409_p2, %p408_p12 }
  0x5b   : > { %p406_p7 = pneg %p405_p6 }
  0x5c   : > { %p412_p11 = por %p411_p8, %p410_p5 }
  0x5e   : > { %p413_p0 = pnand %p412_p11, %p406_p7 }
  0x60   : > { %416 = shalt.err (!%p413_p0)
}
  0x61   : > { %295 = dma.vmem_to_hbm [thread:$0]  (%p672_p9), %s611_s29, 32, %s616_s13, %s188_s15  }
  0x62 PF: > { %s213_s4 = sand.u32 1, %s451_s6   ;;  %p673_p10 = scmp.ne.s32.totalorder %s670_s21, 0 }
  0x63   : > { %p674_p13 = scmp.ge.s32.totalorder %s471_s11, 2  ;;  %s214_s5 = scalar_lea.sflag [#allocation5], %s213_s4 }
  0x65   : > { %p302_p1 = pnand %p674_p13, %p673_p10 }
  0x67   : > { %446 = dma.done.wait (!%p302_p1), %s214_s5, 32  }
  0x68   : > { %448 = vsyncadd (!%p302_p1), %s214_s5, 4294967264  ;;  %s17_s11 = sadd.s32 1, %s471_s11   ;;  %s675_s6 = smov %s455_s7 }
  0x69   : > { %p14_p3 = scmp.ge.s32.totalorder %s17_s11, 4   ;;  %s676_s7 = smov %s459_s8 }
  0x6a   : > { %s677_s8 = smov %s545_s20  ;;  %s678_s9 = smov %s467_s10 }
  0x6b   : > { %s679_s10 = smov %s681_s14  ;;  %16 = sbr.rel (!%p14_p3) target bundleno = 6 (0x6), region = 77 }
  0x72   :  { %219 = vsyncpa [#allocation4], 1 }
  0x73   :  { %221 = vsyncpa [#allocation4 + $0x1], 1 }
  0x74   :  { %222 = vsyncpa [#allocation5], 1 }
  0x75   :  { %224 = vsyncpa [#allocation5 + $0x1], 1 }

</bundles_post_ra>
